<compile_context>
chip_gen: v5e
topology: v5e:2x2
jax: 0.10.0
libtpu: 0.0.40
codegen_flags: <defaults>
</compile_context>

<pallas_src>
import functools

import jax
import jax.numpy as jnp
from jax.experimental import pallas as pl
from jax.experimental.pallas import tpu as pltpu


def _sdpa_kernel(q_ref, k_ref, v_ref, o_ref, m_sc, l_sc, acc_sc, *, scale):
    ki = pl.program_id(2)

    @pl.when(ki == 0)
    def _init():
        m_sc[...] = jnp.full_like(m_sc, -jnp.inf)
        l_sc[...] = jnp.zeros_like(l_sc)
        acc_sc[...] = jnp.zeros_like(acc_sc)

    compute_dtype = q_ref.dtype

    q = q_ref[...]                                 # (tq, D), native dtype
    if scale:                                      # mirrors PyTorch `if scale:`
        # Fold the scale into Q: s*(Q@K^T) == (s*Q)@K^T, but only (tq, D)
        # elements are touched instead of (tq, tk) per k-step.
        q = (q * jnp.asarray(scale, dtype=compute_dtype)).astype(compute_dtype)

    # scores = Q @ K^T  -> (tq, tk); contraction over D, transposed RHS is
    # handled natively by the MXU (no explicit transpose / upcast).
    s = jax.lax.dot_general(
        q, k_ref[...], (((1,), (1,)), ((), ())),
        preferred_element_type=jnp.float32,
    )

    # Online (streaming) softmax over the key axis, statistics in f32.
    m_prev = m_sc[...]                             # (tq, 1)
    m_new = jnp.maximum(m_prev, s.max(axis=-1, keepdims=True))
    alpha = jnp.exp(m_prev - m_new)                # rescale of previous partials
    p = jnp.exp(s - m_new)                         # (tq, tk) f32

    l_sc[...] = alpha * l_sc[...] + p.sum(axis=-1, keepdims=True)
    # P @ V on the MXU in the compute dtype (bf16 fast path when inputs are
    # bf16), accumulating into the f32 scratch.
    acc_sc[...] = alpha * acc_sc[...] + jnp.dot(
        p.astype(compute_dtype), v_ref[...], preferred_element_type=jnp.float32
    )
    m_sc[...] = m_new

    @pl.when(ki == pl.num_programs(2) - 1)
    def _finalize():
        l = l_sc[...]
        inv_l = pl.reciprocal(l, approx=True)      # EUP slot (≈ free)
        inv_l = inv_l * (2.0 - l * inv_l)          # one NR step, (tq,1) VPU work
        o_ref[...] = (acc_sc[...] * inv_l).astype(o_ref.dtype)


def scaled_dot_product_attention(q, k, v, scale=None, *, block_q=256, block_k=256):
    """q: (B, Lq, D), k: (B, Lk, D), v: (B, Lk, Dv).  Returns (B, Lq, Dv)."""
    B, Lq, D = q.shape
    _, Lk, Dk = k.shape
    _, Lk_v, Dv = v.shape
    assert Dk == D and Lk_v == Lk

    tq = min(block_q, Lq)
    tk = min(block_k, Lk)
    assert Lq % tq == 0 and Lk % tk == 0, "sequence lengths must divide the tile sizes"

    # Sublane-packing check: second-to-last block dim must be a multiple of
    # 8 (f32) / 16 (bf16) / 32 (int8) unless the block spans the full axis.
    min_sublane = 8 * (4 // jnp.dtype(q.dtype).itemsize)
    assert (tq == Lq) or (tq % min_sublane == 0), "block_q must match dtype sublane packing"
    assert (tk == Lk) or (tk % min_sublane == 0), "block_k must match dtype sublane packing"

    grid = (B, Lq // tq, Lk // tk)
    kernel = functools.partial(_sdpa_kernel, scale=scale)

    return pl.pallas_call(
        kernel,
        out_shape=jax.ShapeDtypeStruct((B, Lq, Dv), q.dtype),
        grid_spec=pltpu.PrefetchScalarGridSpec(
            num_scalar_prefetch=0,
            grid=grid,
            in_specs=[
                # batch dim squeezed out of the kernel refs -> clean 2D MXU matmuls
                pl.BlockSpec((None, tq, D), lambda b, qi, ki: (b, qi, 0)),   # Q
                # NOTE(v5e): if a trace shows exposed K/V DMA, add
                # pipeline_mode=pl.Buffered(3) to the K/V specs below.
                pl.BlockSpec((None, tk, D), lambda b, qi, ki: (b, ki, 0)),   # K
                pl.BlockSpec((None, tk, Dv), lambda b, qi, ki: (b, ki, 0)),  # V
            ],
            # Output block index is constant along the k (reduction) axis:
            # it stays resident in VMEM and is stored once, on the last k step.
            out_specs=pl.BlockSpec((None, tq, Dv), lambda b, qi, ki: (b, qi, 0)),
            scratch_shapes=[
                pltpu.VMEM((tq, 1), jnp.float32),    # running max m
                pltpu.VMEM((tq, 1), jnp.float32),    # running denom l
                pltpu.VMEM((tq, Dv), jnp.float32),   # f32 output accumulator
            ],
        ),
        compiler_params=pltpu.CompilerParams(
            # batch & q-blocks shard across TensorCores (v7x); k is a reduction.
            # Keep B*(Lq/tq) >= 2 on v7x so both cores get work.
            dimension_semantics=("parallel", "parallel", "arbitrary"),
        ),
    )(q, k, v)


def reference(q, k, v, scale=None):
    att = jnp.einsum("bqd,bkd->bqk", q, k)
    if scale:
        att = att * scale
    att = jax.nn.softmax(att, axis=-1)
    return jnp.einsum("bqk,bkd->bqd", att, v)


if __name__ == "__main__":
    batch, seq, dim = 2, 8, 32

    key = jax.random.PRNGKey(0)
    kq, kk, kv = jax.random.split(key, 3)
    Q = jax.random.normal(kq, (batch, seq, dim), dtype=jnp.float32)
    K = jax.random.normal(kk, (batch, seq, dim), dtype=jnp.float32)
    V = jax.random.normal(kv, (batch, seq, dim), dtype=jnp.float32)

    # With scale (typical usage: 1/sqrt(d_k))
    scale = 1.0 / (dim ** 0.5)
    out_scaled = jax.block_until_ready(scaled_dot_product_attention(Q, K, V, scale))
    ref_scaled = reference(Q, K, V, scale)
    assert out_scaled.shape == (batch, seq, dim) and out_scaled.dtype == Q.dtype
    assert jnp.allclose(out_scaled, ref_scaled, atol=1e-4, rtol=1e-4), "mismatch (scaled)"

    # Without scale (scale=None branch of the PyTorch forward)
    out_plain = jax.block_until_ready(scaled_dot_product_attention(Q, K, V, None))
    ref_plain = reference(Q, K, V, None)
    assert jnp.allclose(out_plain, ref_plain, atol=1e-4, rtol=1e-4), "mismatch (unscaled)"

    print("KERNEL_OK")
</pallas_src>

<mosaic_0001>
module attributes {stable_mosaic.version = 11 : i64} {
  func.func @_sdpa_kernel(%arg0: i32, %arg1: i32, %arg2: i32, %arg3: memref<1x8x32xf32, #tpu.memory_space<vmem>>, %arg4: memref<1x8x32xf32, #tpu.memory_space<vmem>>, %arg5: memref<1x8x32xf32, #tpu.memory_space<vmem>>, %arg6: memref<1x8x32xf32, #tpu.memory_space<vmem>>, %arg7: memref<8x1xf32, #tpu.memory_space<vmem>>, %arg8: memref<8x1xf32, #tpu.memory_space<vmem>>, %arg9: memref<8x32xf32, #tpu.memory_space<vmem>>) attributes {dimension_semantics = [#tpu.dimension_semantics<parallel>, #tpu.dimension_semantics<parallel>, #tpu.dimension_semantics<arbitrary>], iteration_bounds = array<i64: 2, 1, 1>, scalar_prefetch = 0 : i64, scratch_operands = 3 : i64, tpu.core_type = #tpu.core_type<tc>, window_params = [{transform_indices = @transform_0, window_bounds = array<i64: 1, 8, 32>}, {transform_indices = @transform_1, window_bounds = array<i64: 1, 8, 32>}, {transform_indices = @transform_2, window_bounds = array<i64: 1, 8, 32>}, {transform_indices = @transform_3, window_bounds = array<i64: 1, 8, 32>}]} {
    %c0_i32 = arith.constant 0 : i32
    %0 = arith.cmpi eq, %arg2, %c0_i32 : i32
    %1 = arith.extui %0 : i1 to i32
    %c0_i32_0 = arith.constant 0 : i32
    %2 = arith.cmpi ne, %1, %c0_i32_0 : i32
    scf.if %2 {
      %cst_27 = arith.constant 0xFF800000 : f32
      %37 = vector.broadcast %cst_27 : f32 to vector<8x1xf32>
      %c0_28 = arith.constant 0 : index
      %c0_29 = arith.constant 0 : index
      %38 = vector.load %arg7[%c0_28, %c0_29] : memref<8x1xf32, #tpu.memory_space<vmem>>, vector<8x1xf32>
      tpu.vector_store %arg7[%c0_28, %c0_29], %37 {strides = array<i32>} : memref<8x1xf32, #tpu.memory_space<vmem>>, vector<8x1xf32>,
      %cst_30 = arith.constant 0.000000e+00 : f32
      %39 = vector.broadcast %cst_30 : f32 to vector<8x1xf32>
      %c0_31 = arith.constant 0 : index
      %c0_32 = arith.constant 0 : index
      %40 = vector.load %arg8[%c0_31, %c0_32] : memref<8x1xf32, #tpu.memory_space<vmem>>, vector<8x1xf32>
      tpu.vector_store %arg8[%c0_31, %c0_32], %39 {strides = array<i32>} : memref<8x1xf32, #tpu.memory_space<vmem>>, vector<8x1xf32>,
      %cst_33 = arith.constant 0.000000e+00 : f32
      %41 = vector.broadcast %cst_33 : f32 to vector<8x32xf32>
      %c0_34 = arith.constant 0 : index
      %c0_35 = arith.constant 0 : index
      %42 = vector.load %arg9[%c0_34, %c0_35] : memref<8x32xf32, #tpu.memory_space<vmem>>, vector<8x32xf32>
      tpu.vector_store %arg9[%c0_34, %c0_35], %41 {strides = array<i32>} : memref<8x32xf32, #tpu.memory_space<vmem>>, vector<8x32xf32>,
    } else {
    }
    %c0 = arith.constant 0 : index
    %c0_1 = arith.constant 0 : index
    %c0_2 = arith.constant 0 : index
    %3 = vector.load %arg3[%c0, %c0_1, %c0_2] : memref<1x8x32xf32, #tpu.memory_space<vmem>>, vector<1x8x32xf32>
    %4 = vector.shape_cast %3 : vector<1x8x32xf32> to vector<8x32xf32>
    %cst = arith.constant 0.176776692 : f32
    %5 = vector.broadcast %cst : f32 to vector<8x32xf32>
    %6 = arith.mulf %4, %5 : vector<8x32xf32>
    %c0_3 = arith.constant 0 : index
    %c0_4 = arith.constant 0 : index
    %c0_5 = arith.constant 0 : index
    %7 = vector.load %arg4[%c0_3, %c0_4, %c0_5] : memref<1x8x32xf32, #tpu.memory_space<vmem>>, vector<1x8x32xf32>
    %8 = vector.shape_cast %7 : vector<1x8x32xf32> to vector<8x32xf32>
    %cst_6 = arith.constant dense<0.000000e+00> : vector<8x8xf32>
    %9 = tpu.matmul %6, %8, %cst_6 {dimension_numbers = #tpu.dot_dimension_numbers<[1], [1], [0], [0], [0, 0, 1, 0], [], []>} : vector<8x32xf32>, vector<8x32xf32>, vector<8x8xf32> -> vector<8x8xf32>
    %c0_7 = arith.constant 0 : index
    %c0_8 = arith.constant 0 : index
    %10 = vector.load %arg7[%c0_7, %c0_8] : memref<8x1xf32, #tpu.memory_space<vmem>>, vector<8x1xf32>
    %cst_9 = arith.constant dense<0xFF800000> : vector<8xf32>
    %11 = vector.multi_reduction <maximumf>, %9, %cst_9 [1] : vector<8x8xf32> to vector<8xf32>
    %12 = vector.shape_cast %11 : vector<8xf32> to vector<8x1xf32>
    %13 = arith.maximumf %10, %12 : vector<8x1xf32>
    %14 = arith.subf %10, %13 : vector<8x1xf32>
    %15 = math.exp %14 : vector<8x1xf32>
    %16 = vector.broadcast %13 : vector<8x1xf32> to vector<8x8xf32>
    %17 = arith.subf %9, %16 : vector<8x8xf32>
    %18 = math.exp %17 : vector<8x8xf32>
    %c0_10 = arith.constant 0 : index
    %c0_11 = arith.constant 0 : index
    %19 = vector.load %arg8[%c0_10, %c0_11] : memref<8x1xf32, #tpu.memory_space<vmem>>, vector<8x1xf32>
    %20 = arith.mulf %15, %19 : vector<8x1xf32>
    %cst_12 = arith.constant dense<0.000000e+00> : vector<8xf32>
    %21 = vector.multi_reduction <add>, %18, %cst_12 [1] : vector<8x8xf32> to vector<8xf32>
    %22 = vector.shape_cast %21 : vector<8xf32> to vector<8x1xf32>
    %23 = arith.addf %20, %22 : vector<8x1xf32>
    %c0_13 = arith.constant 0 : index
    %c0_14 = arith.constant 0 : index
    %24 = vector.load %arg8[%c0_13, %c0_14] : memref<8x1xf32, #tpu.memory_space<vmem>>, vector<8x1xf32>
    tpu.vector_store %arg8[%c0_13, %c0_14], %23 {strides = array<i32>} : memref<8x1xf32, #tpu.memory_space<vmem>>, vector<8x1xf32>,
    %c0_15 = arith.constant 0 : index
    %c0_16 = arith.constant 0 : index
    %25 = vector.load %arg9[%c0_15, %c0_16] : memref<8x32xf32, #tpu.memory_space<vmem>>, vector<8x32xf32>
    %26 = vector.broadcast %15 : vector<8x1xf32> to vector<8x32xf32>
    %27 = arith.mulf %26, %25 : vector<8x32xf32>
    %c0_17 = arith.constant 0 : index
    %c0_18 = arith.constant 0 : index
    %c0_19 = arith.constant 0 : index
    %28 = vector.load %arg5[%c0_17, %c0_18, %c0_19] : memref<1x8x32xf32, #tpu.memory_space<vmem>>, vector<1x8x32xf32>
    %29 = vector.shape_cast %28 : vector<1x8x32xf32> to vector<8x32xf32>
    %cst_20 = arith.constant dense<0.000000e+00> : vector<8x32xf32>
    %30 = tpu.matmul %18, %29, %cst_20 {dimension_numbers = #tpu.dot_dimension_numbers<[1], [0], [0], [1], [0, 0, 1, 1], [], []>} : vector<8x8xf32>, vector<8x32xf32>, vector<8x32xf32> -> vector<8x32xf32>
    %31 = arith.addf %27, %30 : vector<8x32xf32>
    %c0_21 = arith.constant 0 : index
    %c0_22 = arith.constant 0 : index
    %32 = vector.load %arg9[%c0_21, %c0_22] : memref<8x32xf32, #tpu.memory_space<vmem>>, vector<8x32xf32>
    tpu.vector_store %arg9[%c0_21, %c0_22], %31 {strides = array<i32>} : memref<8x32xf32, #tpu.memory_space<vmem>>, vector<8x32xf32>,
    %c0_23 = arith.constant 0 : index
    %c0_24 = arith.constant 0 : index
    %33 = vector.load %arg7[%c0_23, %c0_24] : memref<8x1xf32, #tpu.memory_space<vmem>>, vector<8x1xf32>
    tpu.vector_store %arg7[%c0_23, %c0_24], %13 {strides = array<i32>} : memref<8x1xf32, #tpu.memory_space<vmem>>, vector<8x1xf32>,
    %c0_i32_25 = arith.constant 0 : i32
    %34 = arith.cmpi eq, %arg2, %c0_i32_25 : i32
    %35 = arith.extui %34 : i1 to i32
    %c0_i32_26 = arith.constant 0 : i32
    %36 = arith.cmpi ne, %35, %c0_i32_26 : i32
    scf.if %36 {
      %c0_27 = arith.constant 0 : index
      %c0_28 = arith.constant 0 : index
      %37 = vector.load %arg8[%c0_27, %c0_28] : memref<8x1xf32, #tpu.memory_space<vmem>>, vector<8x1xf32>
      %38 = tpu.reciprocal %37 {approx = true} : vector<8x1xf32> -> vector<8x1xf32>
      %39 = arith.mulf %37, %38 : vector<8x1xf32>
      %cst_29 = arith.constant 2.000000e+00 : f32
      %40 = vector.broadcast %cst_29 : f32 to vector<8x1xf32>
      %41 = arith.subf %40, %39 : vector<8x1xf32>
      %42 = arith.mulf %38, %41 : vector<8x1xf32>
      %c0_30 = arith.constant 0 : index
      %c0_31 = arith.constant 0 : index
      %43 = vector.load %arg9[%c0_30, %c0_31] : memref<8x32xf32, #tpu.memory_space<vmem>>, vector<8x32xf32>
      %44 = vector.broadcast %42 : vector<8x1xf32> to vector<8x32xf32>
      %45 = arith.mulf %43, %44 : vector<8x32xf32>
      %c0_32 = arith.constant 0 : index
      %c0_33 = arith.constant 0 : index
      %c0_34 = arith.constant 0 : index
      %46 = vector.load %arg6[%c0_32, %c0_33, %c0_34] : memref<1x8x32xf32, #tpu.memory_space<vmem>>, vector<1x8x32xf32>
      %47 = vector.shape_cast %46 : vector<1x8x32xf32> to vector<8x32xf32>
      %48 = vector.shape_cast %45 : vector<8x32xf32> to vector<1x8x32xf32>
      tpu.vector_store %arg6[%c0_32, %c0_33, %c0_34], %48 {strides = array<i32>} : memref<1x8x32xf32, #tpu.memory_space<vmem>>, vector<1x8x32xf32>,
    } else {
    }
    return
  }
  func.func @transform_0(%arg0: i32, %arg1: i32, %arg2: i32) -> (i32, i32, i32) {
    %c0_i32 = arith.constant 0 : i32
    %c0_i32_0 = arith.constant 0 : i32
    return %arg0, %arg1, %c0_i32 : i32, i32, i32
  }
  func.func @transform_1(%arg0: i32, %arg1: i32, %arg2: i32) -> (i32, i32, i32) {
    %c0_i32 = arith.constant 0 : i32
    %c0_i32_0 = arith.constant 0 : i32
    return %arg0, %arg2, %c0_i32 : i32, i32, i32
  }
  func.func @transform_2(%arg0: i32, %arg1: i32, %arg2: i32) -> (i32, i32, i32) {
    %c0_i32 = arith.constant 0 : i32
    %c0_i32_0 = arith.constant 0 : i32
    return %arg0, %arg2, %c0_i32 : i32, i32, i32
  }
  func.func @transform_3(%arg0: i32, %arg1: i32, %arg2: i32) -> (i32, i32, i32) {
    %c0_i32 = arith.constant 0 : i32
    %c0_i32_0 = arith.constant 0 : i32
    return %arg0, %arg1, %c0_i32 : i32, i32, i32
  }
}

</mosaic_0001>

<bundles_post_ra>
// kernel: tpu_custom_call.1
= control target key start
LH: loop header
LB: loop body
LE: loop exit
PB: predicated region body
PF: predicated region fallthrough
CT: control target
= control target key end

     0   :  { %s1029_s0 = inlined_call_operand.hbm [shape: f32[2,8,32], index: 0, kind: input, shape index: {}]   ;;  %s1030_s1 = inlined_call_operand.hbm [shape: f32[2,8,32], index: 1, kind: input, shape index: {}]   ;;  %s1031_s2 = inlined_call_operand.hbm [shape: f32[2,8,32], index: 2, kind: input, shape index: {}]   ;;  %s1032_s3 = inlined_call_operand.hbm [shape: f32[2,8,32], index: 3, kind: output, shape index: {}]  }
   0x1   :  { %1035 = sst [smem:[#allocation18_spill]] %s1030_s1 }
   0x2   :  { %8 = vsyncpa [#allocation6], 0 }
   0x3   :  { %10 = vsyncpa [#allocation6 + $0x1], 0 }
   0x4   :  { %11 = vsyncpa [#allocation9], 0 }
   0x5   :  { %13 = vsyncpa [#allocation9 + $0x1], 0 }
   0x6   :  { %14 = vsyncpa [#allocation7], 0 }
   0x7   :  { %16 = vsyncpa [#allocation7 + $0x1], 0  ;;  %s859_s12 = smov 0   ;;  %s861_s13 = smov 0  }
   0x8   :  { %s863_s14 = smov 0   ;;  %s865_s15 = smov 0  }
   0x9   :  { %s867_s16 = smov 0   ;;  %s869_s17 = smov 0  }
   0xa LB: > { %1036 = sst [smem:[#allocation15_spill]] %s830_s16  ;;  %s890_s18 = sadd.s32 4294967295, %s834_s17   ;;  %s834_s17 = sphi %s869_s17, %s22_s17   ;;  %s830_s16 = sphi %s867_s16, %s1048_s16   ;;  %s826_s15 = sphi %s865_s15, %s1047_s15   ;;  %s822_s14 = sphi %s863_s14, %s1051_s14   ;;  %s818_s13 = sphi %s861_s13, %s1050_s13   ;;  %s814_s12 = sphi %s859_s12, %s1049_s12  }
   0xb   : > { %s553_s19 = sadd.s32 4294967294, %s834_s17   ;;  %s41_s20 = sadd.s32 1, %s830_s16 }
   0xc   : > { %s50_s21 = sadd.s32 1, %s822_s14  ;;  %p43_p0 = scmp.ge.s32.totalorder %s41_s20, 2 }
   0xd   : > { %p57_p1 = scmp.ne.s32.totalorder %s822_s14, %s818_s13  ;;  %p58_p2 = scmp.eq.s32.totalorder %s834_s17, 0 }
   0xe   : > { %p63_p3 = scmp.ne.s32.totalorder %s818_s13, %s814_s12  ;;  %s1053_s20 = smov (%p43_p0, %s41_s20), 0 }
   0xf   : > { %1037 = sst [smem:[#allocation16_spill]] %s1053_s20  ;;  %p902_p4 = por %p58_p2, %p57_p1 }
  0x10   : > { %p64_p5 = scmp.eq.s32.totalorder %s890_s18, 0  ;;  %s45_s23 = ssub.s32 %s830_s16, %s1053_s20 }
  0x11   : > { %p145_p6 = scmp.eq.s32.totalorder %s890_s18, 1  ;;  %p48_p7 = scmp.eq.s32.totalorder %s45_s23, 0 }
  0x12   : > { %p910_p8 = por %p64_p5, %p63_p3  ;;  %p151_p10 = scmp.eq.s32.totalorder %s553_s19, 1 }
  0x13   : > { %p914_p9 = por %p145_p6, %p57_p1  ;;  %p555_p12 = scmp.ge.s32.totalorder %s834_s17, 2 }
  0x14   : > { %s919_s26 = scalar_select %p48_p7, %s822_s14, %s50_s21  }
  0x15   : > { %p921_p11 = por %p151_p10, %p63_p3  ;;  %p596_p13 = scmp.lt.s32.totalorder %s834_s17, 2 }
  0x16   : > { %1041 = sst [smem:[#allocation17_spill]] %s919_s26  ;;  %s171_s28 = sand.u32 1, %s822_s14  }
  0x17   : > { %s556_s29 = sshll.u32 %s171_s28, 3  ;;  %s557_s30 = sshll.u32 %s830_s16, 3 }
  0x18   : > { %p931_p0 = pnand %p596_p13, %p902_p4  ;;  %s191_s5 = sand.u32 1, %s834_s17  }
  0x19   : > { %s1044_s1 = sld [smem:[#allocation18_spill]]  ;;  %s195_s10 = scalar_lea.vmem [#allocation8], %s556_s29 }
  0x1a   : > { %s204_s11 = sshll.u32 %s195_s10, 4  ;;  %s192_s19 = scalar_lea.sflag [#allocation9], %s191_s5  ;;  %s205_s11 = int_to_ptr.vmem [resolvable:$true] %s204_s11 }
  0x1b   : > { %p562_p1 = scmp.ge.s32.totalorder %s834_s17, 1  ;;  %p229_p2 = scmp.lt.s32.totalorder %s834_s17, 3 }
  0x1c   : > { %s180_s6 = scalar_lea.hbm %s1029_s0, %s557_s30  ;;  %s172_s10 = scalar_lea.sflag [#allocation6], %s171_s28 }
  0x1d   : > { %p943_p3 = pnand %p562_p1, %p229_p2  ;;  %s182_s7 = sshll.u32 %s180_s6, 4  ;;  %s183_s7 = int_to_ptr.hbm [resolvable:$true] %s182_s7 }
  0x1e   : > { %s215_s16 = scalar_lea.vmem [#allocation10], %s556_s29  ;;  %s960_s22 = sand.u32 (!%p943_p3), 1, %s818_s13  }
  0x1f   : > { %s200_s8 = scalar_lea.hbm %s1044_s1, %s557_s30  ;;  %s224_s26 = sshll.u32 %s215_s16, 4  ;;  %s225_s26 = int_to_ptr.vmem [resolvable:$true] %s224_s26 }
  0x20   : > { %s202_s9 = sshll.u32 %s200_s8, 4  ;;  %s175_s8 = scalar_lea.vmem [#allocation5], %s556_s29  ;;  %s203_s9 = int_to_ptr.hbm [resolvable:$true] %s202_s9 }
  0x21   : > { %588 = dma.hbm_to_vmem [thread:$0]  (!%p931_p0), %s203_s9, 128, %s205_s11, %s192_s19  }
  0x22   : > { %s184_s1 = sshll.u32 %s175_s8, 4  ;;  %s220_s11 = scalar_lea.hbm %s1031_s2, %s557_s30  ;;  %s185_s1 = int_to_ptr.vmem [resolvable:$true] %s184_s1 }
  0x23   : > { %585 = dma.hbm_to_vmem [thread:$0]  (!%p931_p0), %s183_s7, 128, %s185_s1, %s172_s10  }
  0x24   : > { %s222_s20 = sshll.u32 %s220_s11, 4  ;;  %233 = sbr.rel (%p943_p3) target bundleno = 656 (0x290), region = 32  ;;  %s223_s20 = int_to_ptr.hbm [resolvable:$true] %s222_s20 }
  0x25   : > { %591 = dma.hbm_to_vmem [thread:$0]  (!%p931_p0), %s223_s20, 128, %s225_s26, %s192_s19  }
  0x26   : > { %s963_s1 = sshll.u32 (!%p943_p3), %s960_s22, 3  ;;  %s236_s28 = scalar_lea.sflag (!%p943_p3), [#allocation6], %s960_s22 }
  0x27   : > { %s239_s30 = scalar_lea.vmem (!%p943_p3), [#allocation5], %s963_s1 }
  0x29   : > { %801 = dma.done.wait (%p910_p8), %s236_s28, 128  }
  0x2a   : > { %803 = vsyncadd (%p910_p8), %s236_s28, 4294967168  ;;  %s245_s16 = sand.u32 1, %s890_s18   ;;  %s249_s26 = scalar_lea.vmem [#allocation8], %s963_s1 }
  0x2b   : > { %s246_s20 = scalar_lea.sflag [#allocation9], %s245_s16 }
  0x2c   : > { %805 = dma.done.wait (%p910_p8), %s246_s20, 256  }
  0x2d   : > { %807 = vsyncadd (%p910_p8), %s246_s20, 4294967040  ;;  %vm300_vm0 = vcmask 261120   ;;  %v836_v0 = vmov 0.0   ;;  %v304_v1 = vld [vmem:[%s249_s26] sm:$0xff]  ;;  %v302_v2 = vld [vmem:[%s239_s30] sm:$0xff]  ;;  %vm297_vm1 = vcmask 7168  }
  0x2e   : > { %301 = vst.msk [vmem:[#allocation4] sm:$0xff] %vm300_vm0, %v836_v0  ;;  %567 = vmatpush.xpose.msk.msra.mxu0 %vm300_vm0, %v304_v1  ;;  %v303_v3 = vmul.f32 0.17677669, %v302_v2  ;;  %v837_v4 = vmov -inf   ;;  %vm333_vm2 = vcmask 64512   ;;  %v838_v7 = vmov 0  }
  0x2f   : > { %298 = vst.msk [vmem:[#allocation2] sm:$0xff] %vm297_vm1, %v837_v4  ;;  %649 = vset.pattern.permute.xlu0 %v838_v7  ;;  %650 = vset.pattern.permute.xlu1 %v838_v7  ;;  %s259_s18 = scalar_lea.vmem [#allocation10], %s963_s1  ;;  %s571_s24 = sshll.u32 %s826_s15, 3 }
  0x30   : > { %299 = vst.msk [vmem:[#allocation3] sm:$0xff] %vm297_vm1, %v836_v0  ;;  %651 = vset.pattern.permute.xlu2 %v838_v7  ;;  %v364_v12 = vld [vmem:[%s259_s18] sm:$0xff]  ;;  %s419_s19 = scalar_lea.hbm %s1032_s3, %s571_s24  ;;  %s292_s21 = scalar_lea.vmem [#allocation11], %s963_s1 }
  0x31   : > { %568 = vmatmul.msk.f32.vlgmr.msra.gmra.mxu0 %vm300_vm0, %v303_v3  ;;  %383 = vmatpush.msra.mxu1 %v364_v12  ;;  %s421_s23 = sshll.u32 %s292_s21, 4  ;;  %s423_s6 = sshll.u32 %s419_s19, 4  ;;  %s422_s23 = int_to_ptr.vmem [resolvable:$true] %s421_s23  ;;  %s424_s6 = int_to_ptr.hbm [resolvable:$true] %s423_s6 }
  0x32   : > { %s408_s7 = scalar_lea.sflag [#allocation7], %s960_s22  ;;  %s762_s8 = sshra.s32 %s424_s6, 4  ;;  %s763_s8 = int_to_ptr.hbm [resolvable:$true] %s762_s8 }
  0x33   : > { %s764_s10 = scalar_lea.hbm %s763_s8, 8  ;;  %s768_s9 = scalar_lea.hbm %s1032_s3, 16 }
  0x34   : > { %p765_p4 = scmp.ne.s32.totalorder %s763_s8, %s764_s10  ;;  %p769_p7 = scmp.lt.s32.totalorder %s763_s8, %s1032_s3 }
  0x35   : > { %v357_v28 = vld [vmem:[#allocation4] sm:$0xff]  ;;  %p770_p8 = scmp.lt.s32.totalorder %s768_s9, %s764_s10 }
  0x36   : > { %v332_v8 = vld [vmem:[#allocation2] sm:$0xff]  ;;  %p766_p5 = pnand %p765_p4, %p914_p9 }
  0x37   : > { %v349_v20 = vld [vmem:[#allocation3] sm:$0xff]  ;;  %p771_p10 = por %p770_p8, %p769_p7 }
  0x38   : > { %p767_p6 = pneg %p766_p5 }
  0x3a   : > { %p772_p13 = pnand %p771_p10, %p767_p6 }
  0xae   : > { %v329_v5 = vpop.f32.mrf.mxu0 }
  0xaf   : > { %v334_v6 = vsel %vm333_vm2, %v329_v5, -inf }
  0xb0   : > { %335 = vmax.xlane.f32.xlu0 %v334_v6 }
 0x123   : > { %v336_v9 = vpop.xlane.xlu0 %335 }
 0x124   : > { %v337_v10 = vmax.f32 %v332_v8, %v336_v9 }
 0x126   : > { %v338_v11 = vsub.f32 %v332_v8, %v337_v10  ;;  %390 = vst.msk [vmem:[#allocation2] sm:$0xff] %vm297_vm1, %v337_v10  ;;  %343 = vperm.xlu0 %649, %v337_v10  }
 0x128   : > { %v339_v18 = vmul.f32 1.442695, %v338_v11 }
 0x198   : > { %v344_v13 = vpop.permute.xlu0 %343 }
 0x199   : > { %v346_v14 = vsub.f32 %v329_v5, %v344_v13 }
 0x19b   : > { %v347_v15 = vmul.f32 1.442695, %v346_v14 }
 0x19d   : > { %652 = vpow2.f32 %v347_v15 }
 0x19e   : > { %654 = vpow2.f32 %v339_v18 }
 0x1a3   : > { %v653_v16 = vpop.eup %652 }
 0x1a4   : > { %569 = vmatmul.msk.f32.vlgmr.msra.gmra.mxu1 %vm333_vm2, %v653_v16  ;;  %v351_v17 = vsel %vm333_vm2, %v653_v16, 0.0  ;;  %v655_v19 = vpop.eup %654 }
 0x1a5   : > { %352 = vadd.xlane.f32.xlu1 %v351_v17  ;;  %v350_v21 = vmul.f32 %v655_v19, %v349_v20 }
 0x1be   : > { %360 = vperm.xlu1 %650, %v655_v19  }
 0x218   : > { %v353_v22 = vpop.xlane.xlu1 %352 }
 0x219   : > { %v354_v23 = vadd.f32 %v353_v22, %v350_v21 }
 0x21b   : > { %356 = vst.msk [vmem:[#allocation3] sm:$0xff] %vm297_vm1, %v354_v23 }
 0x221   : > { %v385_v32 = vpop.f32.mrf.mxu1 }
 0x222   : > { %v394_v24 = vld [vmem:[#allocation3] sm:$0xff] }
 0x223   : > { %656 = vrcp.f32 %v394_v24 }
 0x229   : > { %v657_v25 = vpop.eup %656 }
 0x22a   : > { %v396_v26 = vmul.f32 %v657_v25, %v394_v24 }
 0x22c   : > { %v397_v27 = vsub.f32 2.0, %v396_v26 }
 0x22e   : > { %v398_v29 = vmul.f32 %v657_v25, %v397_v27 }
 0x230   : > { %v361_v30 = vpop.permute.xlu1 %360  ;;  %402 = vperm.xlu2 %651, %v398_v29  }
 0x231   : > { %v363_v31 = vmul.f32 %v361_v30, %v357_v28 }
 0x233   : > { %v388_v33 = vadd.f32 %v385_v32, %v363_v31 }
 0x235   : > { %389 = vst.msk [vmem:[#allocation4] sm:$0xff] %vm300_vm0, %v388_v33 }
 0x23c   : > { %v399_v34 = vld [vmem:[#allocation4] sm:$0xff] }
 0x28a   : > { %v403_v35 = vpop.permute.xlu2 %402 }
 0x28b   : > { %v405_v36 = vmul.f32 %v403_v35, %v399_v34 }
 0x28d   : > { %406 = vst.msk [vmem:[%s292_s21] sm:$0xff] %vm300_vm0, %v405_v36 }
 0x28e   : > { %775 = shalt.err (!%p772_p13)
}
 0x28f   : > { %580 = dma.vmem_to_hbm [thread:$0]  (%p914_p9), %s422_s23, 128, %s424_s6, %s408_s7  }
 0x290 PF: > { %s435_s22 = sand.u32 1, %s814_s12   ;;  %p593_p0 = pnand %p555_p12, %p921_p11 }
 0x291   : > { %s436_s28 = scalar_lea.sflag [#allocation7], %s435_s22 }
 0x292   : > { %p594_p1 = pneg %p593_p0 }
 0x294   : > { %809 = dma.done.wait (%p594_p1), %s436_s28, 128  }
 0x295   : > { %811 = vsyncadd (%p594_p1), %s436_s28, 4294967168  ;;  %s22_s17 = sadd.s32 1, %s834_s17   ;;  %s1046_s30 = sld [smem:[#allocation17_spill]] }
 0x296   : > { %p19_p2 = scmp.ge.s32.totalorder %s22_s17, 4   ;;  %s1047_s15 = sld [smem:[#allocation15_spill]] }
 0x297   : > { %s1048_s16 = sld [smem:[#allocation16_spill]]  ;;  %s1049_s12 = smov %s818_s13 }
 0x298   : > { %s1050_s13 = smov %s822_s14  ;;  %21 = sbr.rel (!%p19_p2) target bundleno = 10 (0xa), region = 109 }
 0x29b   : > { %s1051_s14 = smov %s1046_s30 }
 0x29d   :  { %442 = vsyncpa [#allocation6], 1 }
 0x29e   :  { %444 = vsyncpa [#allocation6 + $0x1], 1 }
 0x29f   :  { %445 = vsyncpa [#allocation9], 1 }
 0x2a0   :  { %447 = vsyncpa [#allocation9 + $0x1], 1 }
 0x2a1   :  { %448 = vsyncpa [#allocation7], 1 }
 0x2a2   :  { %450 = vsyncpa [#allocation7 + $0x1], 1 }

</bundles_post_ra>
